<compile_context>
chip_gen: v7x
topology: tpu7x:2x2x1
jax: 0.10.0
libtpu: 0.0.40
codegen_flags: <defaults>
</compile_context>

<pallas_src>
import functools

import jax
import jax.numpy as jnp
from jax.experimental import pallas as pl
from jax.experimental.pallas import tpu as pltpu


def _make_divisible(ch, divisor=8, min_ch=None):
    if min_ch is None:
        min_ch = divisor
    new_ch = max(min_ch, int(ch + divisor / 2) // divisor * divisor)
    if new_ch < 0.9 * ch:
        new_ch += divisor
    return new_ch


def _round_up(n, m):
    return ((n + m - 1) // m) * m


def _se_kernel(x_ref, w1_ref, b1_ref, w2_ref, b2_ref, o_ref):
    x = x_ref[...]                       # native dtype, no full-tile upcast
    w1 = w1_ref[...]
    w2 = w2_ref[...]
    b1 = b1_ref[...].astype(jnp.float32)  # read biases once, reuse
    b2 = b2_ref[...].astype(jnp.float32)

    # fc1 + ReLU (f32 accumulation on the MXU)
    h = jnp.dot(x, w1, preferred_element_type=jnp.float32) + b1
    h = jnp.maximum(h, 0.0)

    # fc2 + hardsigmoid: clip(s + 3, 0, 6) / 6
    s = jnp.dot(h.astype(w2.dtype), w2, preferred_element_type=jnp.float32) + b2
    s = jnp.clip(s + 3.0, 0.0, 6.0) * (1.0 / 6.0)

    # gate in x's dtype; avoids materializing an f32 copy of the x tile
    o_ref[...] = (s.astype(x.dtype) * x).astype(o_ref.dtype)


@functools.partial(jax.jit, static_argnames=("block_rows",))
def squeeze_excitation(x, w1, b1, w2, b2, *, block_rows=1024):
    """x: (..., C). w1: (C, S), b1: (1, S), w2: (S, C), b2: (1, C).

    Weights are the PyTorch Linear weights pre-transposed to (in, out).
    block_rows = rows per grid step in the *packed* (lane-dense) layout.
    """
    orig_shape = x.shape
    C = orig_shape[-1]
    S = w1.shape[1]
    x2d = x.reshape(-1, C)
    N = x2d.shape[0]

    # ---- lane-dense packing: fold p tokens into one 128-lane row -----------
    if C < 128 and 128 % C == 0:
        p = 128 // C
    else:
        p = 1
    lane_c = p * C
    lane_s = p * S

    if p > 1:
        # Block-diagonal weights / tiled biases act independently on each of
        # the p tokens packed along the lane axis.
        eye_p = jnp.eye(p, dtype=w1.dtype)
        w1p = jnp.kron(eye_p, w1)                      # (p*C, p*S)
        w2p = jnp.kron(eye_p.astype(w2.dtype), w2)     # (p*S, p*C)
        b1p = jnp.tile(b1, (1, p))                     # (1, p*S)
        b2p = jnp.tile(b2, (1, p))                     # (1, p*C)
    else:
        w1p, b1p, w2p, b2p = w1, b1, w2, b2

    # ---- row tiling with zero-padding (no divisibility requirement) --------
    rows_raw = -(-N // p)                               # cdiv(N, p)
    eff_block = min(block_rows, _round_up(max(rows_raw, 8), 8))
    rows = _round_up(rows_raw, eff_block)
    n_pad = rows * p
    if n_pad != N:
        x2d = jnp.pad(x2d, ((0, n_pad - N), (0, 0)))    # zero rows -> zero out
    x_packed = x2d.reshape(rows, lane_c)

    grid = rows // eff_block
    # NOTE(v7x): for large N this grid is long and "parallel", so both
    # TensorCores get work; the tiny demo below yields grid == 1.

    # ---- explicit VMEM budget: double-buffered in+out tiles + weights ------
    dtype_bytes = jnp.dtype(x.dtype).itemsize
    tile_bytes = eff_block * lane_c * dtype_bytes
    weight_bytes = (lane_c * lane_s + lane_s + lane_s * lane_c + lane_c) * (
        jnp.dtype(w1.dtype).itemsize
    )
    vmem_limit = int(min(64 << 20, 2 * 2 * tile_bytes + 2 * weight_bytes + (8 << 20)))

    out = pl.pallas_call(
        _se_kernel,
        out_shape=jax.ShapeDtypeStruct((rows, lane_c), x.dtype),
        grid_spec=pltpu.PrefetchScalarGridSpec(
            num_scalar_prefetch=0,
            grid=(grid,),
            in_specs=[
                pl.BlockSpec((eff_block, lane_c), lambda i: (i, 0)),
                # constant block indices -> weights/biases stay VMEM-resident
                pl.BlockSpec((lane_c, lane_s), lambda i: (0, 0)),
                pl.BlockSpec((1, lane_s), lambda i: (0, 0)),
                pl.BlockSpec((lane_s, lane_c), lambda i: (0, 0)),
                pl.BlockSpec((1, lane_c), lambda i: (0, 0)),
            ],
            out_specs=pl.BlockSpec((eff_block, lane_c), lambda i: (i, 0)),
        ),
        compiler_params=pltpu.CompilerParams(
            dimension_semantics=("parallel",),
            vmem_limit_bytes=vmem_limit,
        ),
    )(x_packed, w1p, b1p, w2p, b2p)

    out = out.reshape(n_pad, C)[:N]
    return out.reshape(orig_shape)


def _reference(x, w1, b1, w2, b2):
    h = jnp.maximum(x @ w1 + b1, 0.0)
    s = h @ w2 + b2
    s = jnp.clip(s + 3.0, 0.0, 6.0) / 6.0
    return s * x


if __name__ == "__main__":
    key = jax.random.PRNGKey(0)

    batch, seq = 2, 8
    input_c = 32
    squeeze_c = _make_divisible(input_c // 4, 8)  # -> 8

    k_x, k_w1, k_b1, k_w2, k_b2 = jax.random.split(key, 5)

    # PyTorch Linear weight is (out, in); stored pre-transposed as (in, out).
    x = jax.random.normal(k_x, (batch, seq, input_c), dtype=jnp.float32)
    w1 = jax.random.normal(k_w1, (input_c, squeeze_c), dtype=jnp.float32) * 0.1
    b1 = jax.random.normal(k_b1, (1, squeeze_c), dtype=jnp.float32) * 0.1
    w2 = jax.random.normal(k_w2, (squeeze_c, input_c), dtype=jnp.float32) * 0.1
    b2 = jax.random.normal(k_b2, (1, input_c), dtype=jnp.float32) * 0.1

    out = squeeze_excitation(x, w1, b1, w2, b2)
    out = jax.block_until_ready(out)
    ref = _reference(x.reshape(-1, input_c), w1, b1, w2, b2).reshape(x.shape)
    assert jnp.allclose(out, ref, atol=1e-5, rtol=1e-5), "mismatch vs reference"

    # Second check: awkward row count exercises the padding / tail path.
    x2 = jax.random.normal(key, (3, 37, input_c), dtype=jnp.float32)
    out2 = jax.block_until_ready(squeeze_excitation(x2, w1, b1, w2, b2))
    ref2 = _reference(x2.reshape(-1, input_c), w1, b1, w2, b2).reshape(x2.shape)
    assert jnp.allclose(out2, ref2, atol=1e-5, rtol=1e-5), "mismatch (ragged rows)"

    print("KERNEL_OK")
</pallas_src>

<mosaic_0001>
module attributes {stable_mosaic.version = 11 : i64} {
  func.func @_se_kernel(%arg0: i32, %arg1: memref<8x128xf32, #tpu.memory_space<vmem>>, %arg2: memref<128x32xf32, #tpu.memory_space<vmem>>, %arg3: memref<1x32xf32, #tpu.memory_space<vmem>>, %arg4: memref<32x128xf32, #tpu.memory_space<vmem>>, %arg5: memref<1x128xf32, #tpu.memory_space<vmem>>, %arg6: memref<8x128xf32, #tpu.memory_space<vmem>>) attributes {dimension_semantics = [#tpu.dimension_semantics<parallel>], iteration_bounds = array<i64: 1>, scalar_prefetch = 0 : i64, scratch_operands = 0 : i64, tpu.core_type = #tpu.core_type<tc>, window_params = [{transform_indices = @transform_0, window_bounds = array<i64: 8, 128>}, {pipeline_mode = #tpu.pipeline_mode<synchronous>, transform_indices = @transform_1, window_bounds = array<i64: 128, 32>}, {pipeline_mode = #tpu.pipeline_mode<synchronous>, transform_indices = @transform_2, window_bounds = array<i64: 1, 32>}, {pipeline_mode = #tpu.pipeline_mode<synchronous>, transform_indices = @transform_3, window_bounds = array<i64: 32, 128>}, {pipeline_mode = #tpu.pipeline_mode<synchronous>, transform_indices = @transform_4, window_bounds = array<i64: 1, 128>}, {transform_indices = @transform_5, window_bounds = array<i64: 8, 128>}]} {
    %c0 = arith.constant 0 : index
    %c0_0 = arith.constant 0 : index
    %0 = vector.load %arg1[%c0, %c0_0] : memref<8x128xf32, #tpu.memory_space<vmem>>, vector<8x128xf32>
    %c0_1 = arith.constant 0 : index
    %c0_2 = arith.constant 0 : index
    %1 = vector.load %arg2[%c0_1, %c0_2] : memref<128x32xf32, #tpu.memory_space<vmem>>, vector<128x32xf32>
    %c0_3 = arith.constant 0 : index
    %c0_4 = arith.constant 0 : index
    %2 = vector.load %arg4[%c0_3, %c0_4] : memref<32x128xf32, #tpu.memory_space<vmem>>, vector<32x128xf32>
    %c0_5 = arith.constant 0 : index
    %c0_6 = arith.constant 0 : index
    %3 = vector.load %arg3[%c0_5, %c0_6] : memref<1x32xf32, #tpu.memory_space<vmem>>, vector<1x32xf32>
    %c0_7 = arith.constant 0 : index
    %c0_8 = arith.constant 0 : index
    %4 = vector.load %arg5[%c0_7, %c0_8] : memref<1x128xf32, #tpu.memory_space<vmem>>, vector<1x128xf32>
    %cst = arith.constant dense<0.000000e+00> : vector<8x32xf32>
    %5 = tpu.matmul %0, %1, %cst {dimension_numbers = #tpu.dot_dimension_numbers<[1], [0], [0], [1], [0, 0, 1, 1], [], []>} : vector<8x128xf32>, vector<128x32xf32>, vector<8x32xf32> -> vector<8x32xf32>
    %6 = vector.broadcast %3 : vector<1x32xf32> to vector<8x32xf32>
    %7 = arith.addf %5, %6 : vector<8x32xf32>
    %cst_9 = arith.constant 0.000000e+00 : f32
    %8 = vector.broadcast %cst_9 : f32 to vector<8x32xf32>
    %9 = arith.maximumf %7, %8 : vector<8x32xf32>
    %cst_10 = arith.constant dense<0.000000e+00> : vector<8x128xf32>
    %10 = tpu.matmul %9, %2, %cst_10 {dimension_numbers = #tpu.dot_dimension_numbers<[1], [0], [0], [1], [0, 0, 1, 1], [], []>} : vector<8x32xf32>, vector<32x128xf32>, vector<8x128xf32> -> vector<8x128xf32>
    %11 = vector.broadcast %4 : vector<1x128xf32> to vector<8x128xf32>
    %12 = arith.addf %10, %11 : vector<8x128xf32>
    %cst_11 = arith.constant 3.000000e+00 : f32
    %13 = vector.broadcast %cst_11 : f32 to vector<8x128xf32>
    %14 = arith.addf %12, %13 : vector<8x128xf32>
    %cst_12 = arith.constant 0.000000e+00 : f32
    %cst_13 = arith.constant 6.000000e+00 : f32
    %15 = vector.broadcast %cst_12 : f32 to vector<8x128xf32>
    %16 = arith.maximumf %15, %14 : vector<8x128xf32>
    %17 = vector.broadcast %cst_13 : f32 to vector<8x128xf32>
    %18 = arith.minimumf %17, %16 : vector<8x128xf32>
    %cst_14 = arith.constant 0.166666672 : f32
    %19 = vector.broadcast %cst_14 : f32 to vector<8x128xf32>
    %20 = arith.mulf %18, %19 : vector<8x128xf32>
    %21 = arith.mulf %20, %0 : vector<8x128xf32>
    %c0_15 = arith.constant 0 : index
    %c0_16 = arith.constant 0 : index
    %22 = vector.load %arg6[%c0_15, %c0_16] : memref<8x128xf32, #tpu.memory_space<vmem>>, vector<8x128xf32>
    tpu.vector_store %arg6[%c0_15, %c0_16], %21 {strides = array<i32>} : memref<8x128xf32, #tpu.memory_space<vmem>>, vector<8x128xf32>,
    return
  }
  func.func @transform_0(%arg0: i32) -> (i32, i32) {
    %c0_i32 = arith.constant 0 : i32
    %c0_i32_0 = arith.constant 0 : i32
    return %arg0, %c0_i32 : i32, i32
  }
  func.func @transform_1(%arg0: i32) -> (i32, i32) {
    %c0_i32 = arith.constant 0 : i32
    %c0_i32_0 = arith.constant 0 : i32
    %c0_i32_1 = arith.constant 0 : i32
    return %c0_i32, %c0_i32_0 : i32, i32
  }
  func.func @transform_2(%arg0: i32) -> (i32, i32) {
    %c0_i32 = arith.constant 0 : i32
    %c0_i32_0 = arith.constant 0 : i32
    %c0_i32_1 = arith.constant 0 : i32
    return %c0_i32, %c0_i32_0 : i32, i32
  }
  func.func @transform_3(%arg0: i32) -> (i32, i32) {
    %c0_i32 = arith.constant 0 : i32
    %c0_i32_0 = arith.constant 0 : i32
    %c0_i32_1 = arith.constant 0 : i32
    return %c0_i32, %c0_i32_0 : i32, i32
  }
  func.func @transform_4(%arg0: i32) -> (i32, i32) {
    %c0_i32 = arith.constant 0 : i32
    %c0_i32_0 = arith.constant 0 : i32
    %c0_i32_1 = arith.constant 0 : i32
    return %c0_i32, %c0_i32_0 : i32, i32
  }
  func.func @transform_5(%arg0: i32) -> (i32, i32) {
    %c0_i32 = arith.constant 0 : i32
    %c0_i32_0 = arith.constant 0 : i32
    return %arg0, %c0_i32 : i32, i32
  }
}

</mosaic_0001>

<bundles_post_ra>
// kernel: squeeze_excitation.1
= control target key start
LH: loop header
LB: loop body
LE: loop exit
PB: predicated region body
PF: predicated region fallthrough
CT: control target
= control target key end

     0   :  { %v314_v0 = vmov 0.0|0.0   ;;  %vm315_vm0 = vmmov 0   ;;  %v316_v4 = vmov 0.0   ;;  %vm126_vm1 = vcmask 261120   ;;  %s419_s1 = inlined_call_operand.vmem [shape: f32[128,32], index: 1, kind: input, shape index: {}]   ;;  %s420_s3 = inlined_call_operand.vmem [shape: f32[32,128], index: 3, kind: input, shape index: {}]   ;;  %s421_s0 = inlined_call_operand.vmem [shape: f32[8,128], index: 0, kind: input, shape index: {}]   ;;  %s422_s2 = inlined_call_operand.vmem [shape: f32[1,32], index: 2, kind: input, shape index: {}]   ;;  %s423_s4 = inlined_call_operand.vmem [shape: f32[1,128], index: 4, kind: input, shape index: {}]   ;;  %s424_s5 = inlined_call_operand.vmem [shape: f32[8,128], index: 5, kind: output, shape index: {}]  }
   0x1   :  { %281 = vmatprep.subr.bf16.mxu0 %v314_v0  ;;  %v21_v1 = vld [vmem:[%s419_s1] sm:$0xff]  ;;  %v22_v2 = vld [vmem:[%s419_s1 + $0x8] sm:$0xff]  ;;  %v23_v3 = vld [vmem:[%s419_s1 + $0x10] sm:$0xff]  ;;  %267 = vmatprep.mubr.msk.f32.mxu0 %vm315_vm0, %v316_v4 }
   0x2   :  { %v282_v5 = vpack.c.bf16 %v22_v2, %v21_v1  ;;  %v24_v6 = vld [vmem:[%s419_s1 + $0x18] sm:$0xff]  ;;  %305 = vmatprep.subr.bf16.mxu1 %v314_v0  ;;  %278 = vmatprep.mubr.msk.f32.mxu1 %vm315_vm0, %v316_v4  ;;  %v25_v8 = vld [vmem:[%s419_s1 + $0x20] sm:$0xff]  ;;  %v26_v9 = vld [vmem:[%s419_s1 + $0x28] sm:$0xff] }
   0x3   :  { %v285_v7 = vpack.c.bf16 %v24_v6, %v23_v3  ;;  %v37_v10 = vld [vmem:[%s420_s3] sm:$0xff]  ;;  %v38_v11 = vld [vmem:[%s420_s3 + $0x8] sm:$0xff]  ;;  %v288_v12 = vpack.c.bf16 %v26_v9, %v25_v8  ;;  %v27_v14 = vld [vmem:[%s419_s1 + $0x30] sm:$0xff] }
   0x4   :  { %283 = vmatpush3.bf16.msra.mxu0 %v282_v5  ;;  %v306_v13 = vpack.c.bf16 %v38_v11, %v37_v10  ;;  %v28_v15 = vld [vmem:[%s419_s1 + $0x38] sm:$0xff]  ;;  %v29_v17 = vld [vmem:[%s419_s1 + $0x40] sm:$0xff]  ;;  %v30_v18 = vld [vmem:[%s419_s1 + $0x48] sm:$0xff] }
   0x5   :  { %284 = vmatprep.subr.bf16.mxu0 %v314_v0  ;;  %v291_v16 = vpack.c.bf16 %v28_v15, %v27_v14  ;;  %v294_v19 = vpack.c.bf16 %v30_v18, %v29_v17  ;;  %v31_v20 = vld [vmem:[%s419_s1 + $0x50] sm:$0xff]  ;;  %v32_v21 = vld [vmem:[%s419_s1 + $0x58] sm:$0xff]  ;;  %v33_v23 = vld [vmem:[%s419_s1 + $0x60] sm:$0xff] }
   0x6   :  { %307 = vmatpush3.bf16.msra.mxu1 %v306_v13  ;;  %v297_v22 = vpack.c.bf16 %v32_v21, %v31_v20  ;;  %v34_v24 = vld [vmem:[%s419_s1 + $0x68] sm:$0xff]  ;;  %v35_v26 = vld [vmem:[%s419_s1 + $0x70] sm:$0xff]  ;;  %v36_v27 = vld [vmem:[%s419_s1 + $0x78] sm:$0xff] }
   0x7   :  { %308 = vmatprep.subr.bf16.mxu1 %v314_v0  ;;  %v300_v25 = vpack.c.bf16 %v34_v24, %v33_v23  ;;  %v303_v28 = vpack.c.bf16 %v36_v27, %v35_v26  ;;  %v20_v29 = vld [vmem:[%s421_s0] sm:$0xff]  ;;  %v39_v30 = vld [vmem:[%s420_s3 + $0x10] sm:$0xff]  ;;  %v40_v31 = vld [vmem:[%s420_s3 + $0x18] sm:$0xff] }
   0x8   :  { %286 = vmatpush3.bf16.msra.mxu0 %v285_v7  ;;  %v309_v32 = vpack.c.bf16 %v40_v31, %v39_v30  ;;  %v210_v33 = vld [vmem:[%s422_s2] ss:$0 sm:$0xff] }
   0x9   :  { %287 = vmatprep.subr.bf16.mxu0 %v314_v0  ;;  %v211_v38 = vld [vmem:[%s423_s4] ss:$0 sm:$0xff] }
   0xa   :  { %310 = vmatpush3.bf16.msra.mxu1 %v309_v32 }
   0xc   :  { %289 = vmatpush3.bf16.msra.mxu0 %v288_v12 }
   0xd   :  { %290 = vmatprep.subr.bf16.mxu0 %v314_v0 }
  0x10   :  { %292 = vmatpush3.bf16.msra.mxu0 %v291_v16 }
  0x11   :  { %293 = vmatprep.subr.bf16.mxu0 %v314_v0 }
  0x14   :  { %295 = vmatpush3.bf16.msra.mxu0 %v294_v19 }
  0x15   :  { %296 = vmatprep.subr.bf16.mxu0 %v314_v0 }
  0x18   :  { %298 = vmatpush3.bf16.msra.mxu0 %v297_v22 }
  0x19   :  { %299 = vmatprep.subr.bf16.mxu0 %v314_v0 }
  0x1c   :  { %301 = vmatpush3.bf16.msra.mxu0 %v300_v25 }
  0x1d   :  { %302 = vmatprep.subr.bf16.mxu0 %v314_v0 }
  0x20   :  { %304 = vmatpush3.bf16.msra.mxu0 %v303_v28 }
  0x23   :  { %268 = vmatmul.mubr.f32.vlgmr.msra.gmra.mrb[0].mxu0 %v20_v29 }
  0xf6   :  { %v115_v34 = vpop.f32.mrb[0].mxu0 }
  0xf7   :  { %v116_v35 = vadd.f32 %v210_v33, %v115_v34  ;;  %v269_v36 = vpop.f32.mrb[1].mxu0 }
  0xf9   :  { %v119_v37 = vmax.f32 %v116_v35, 0.0 }
  0xfb   :  { %279 = vmatmul.mubr.msk.f32.vlgmr.msra.gmra.mrb[0].mxu1 %vm126_vm1, %v119_v37 }
 0x1ce   :  { %v196_v39 = vpop.f32.mrb[0].mxu1 }
 0x1cf   :  { %v197_v40 = vadd.f32 %v211_v38, %v196_v39  ;;  %v280_v41 = vpop.f32.mrb[1].mxu1 }
 0x1d1   :  { %v200_v42 = vadd.f32 3.0, %v197_v40 }
 0x1d3   :  { %v201_v43 = vmax.f32 %v200_v42, 0.0 }
 0x1d5   :  { %v202_v44 = vmin.f32 %v201_v43, 6.0 }
 0x1d7   :  { %v203_v45 = vmul.f32 0.16666667, %v202_v44 }
 0x1d9   :  { %v204_v46 = vmul.f32 %v203_v45, %v20_v29 }
 0x1db   :  { %205 = vst [vmem:[%s424_s5] sm:$0xff] %v204_v46 }

</bundles_post_ra>
